<compile_context>
chip_gen: v7x
topology: tpu7x:2x2x1
jax: 0.10.0
libtpu: 0.0.40
codegen_flags: <defaults>
</compile_context>

<pallas_src>
import jax
import jax.numpy as jnp
from jax.experimental import pallas as pl
from jax.experimental.pallas import tpu as pltpu


def _noise_injection_kernel(w_ref, img_ref, noise_ref, out_ref):
    # w_ref:     (1,) f32 scalar in SMEM
    # img_ref:   (1, TC, THW) image tile in VMEM
    # noise_ref: (1, 1, THW) noise tile in VMEM (broadcast over the C tile)
    # Scale the noise on the small (1,1,THW) shape first, then a single
    # broadcast add per element of the big tile (~1 VALU op/elem; mem-bound).
    # Compute in f32 regardless of the storage dtype: free under the
    # memory-bound regime and matches the fp32 PyTorch parameter numerics.
    scaled = w_ref[0] * noise_ref[...].astype(jnp.float32)        # (1, 1, THW)
    out = img_ref[...].astype(jnp.float32) + scaled                # (1, TC, THW)
    out_ref[...] = out.astype(out_ref.dtype)


def _vmem_budget():
    """Generation-aware (scoped-VMEM limit, per-step image-tile budget) in bytes."""
    vmem_cap = 128 * 1024 * 1024
    try:
        info = pltpu.get_tpu_info()
        vmem_cap = int(getattr(info, "vmem_capacity_bytes", vmem_cap))
    except Exception:
        pass  # interpret mode / unknown chip: fall through to the conservative default
    if vmem_cap <= 64 * 1024 * 1024:
        # v7x-class: 64 MiB VMEM per TensorCore. Double-buffered (image + out)
        # tiles cost 4x the tile budget, so 8 MiB tiles -> ~32 MiB, under a
        # 44 MiB scoped limit with compiler-scratch headroom.
        return 44 * 1024 * 1024, 8 * 1024 * 1024
    # v5e / v6e: 128 MiB VMEM. Let double-buffered tiles use ~56 MiB.
    return 64 * 1024 * 1024, 14 * 1024 * 1024


def noise_injection(image, weight, noise=None, *, key=None, donate_image=False,
                    _tile_budget_bytes=None):
    """image: (B, C, H, W); weight: shape-(1,) fp32 param; noise: (B, 1, H, W) or None."""
    B, C, H, W = image.shape
    dtype = image.dtype

    if noise is None:
        # TODO(synk): fuse noise generation into the kernel (pltpu.prng_seed per
        # (b, spatial-tile) + pltpu.stateful_normal drawn once on the c == 0 step,
        # channel axis is already innermost) to drop the (B,1,H,W) HBM round-trip.
        if key is None:
            raise ValueError(
                "noise_injection: pass `key=` when noise is None (fresh noise is "
                "drawn per call, like torch Tensor.normal_()).")
        noise = jax.random.normal(key, (B, 1, H, W), dtype=jnp.float32)

    HW = H * W
    img2 = image.reshape(B, C, HW)
    noise2 = noise.reshape(B, 1, HW)
    weight = jnp.asarray(weight, dtype=jnp.float32).reshape(1)

    itemsize = jnp.dtype(dtype).itemsize
    sublane = {4: 8, 2: 16, 1: 32}.get(itemsize, 8)
    vmem_limit, tile_budget = _vmem_budget()
    if _tile_budget_bytes is not None:                 # test hook: force small tiles
        tile_budget = _tile_budget_bytes
    budget_elems = max(tile_budget // itemsize, 128 * sublane)

    # --- tile selection -----------------------------------------------------
    # Prefer THW = full HW (one long contiguous DMA run per (b, c-tile), and a
    # full-extent block is exempt from the 128-multiple rule), then grow the
    # channel tile. Only when HW alone overflows the budget fall back to a
    # 128-multiple spatial tile; the ragged last block is masked by Pallas.
    if C % sublane == 0:
        if HW * sublane <= budget_elems:
            THW = HW
            TC = min(C, max(sublane, (budget_elems // HW) // sublane * sublane))
        else:
            TC = sublane
            THW = min(HW, max(128, (budget_elems // TC) // 128 * 128))
    else:
        TC = C                                # full channel extent (rule-exempt)
        if C * HW <= budget_elems:
            THW = HW
        else:
            THW = max(128, (budget_elems // C) // 128 * 128)

    num_s = pl.cdiv(HW, THW)
    num_c = pl.cdiv(C, TC)

    # v7x has 2 TensorCores sharded over "parallel" grid axes: don't let a big
    # single-batch feature map collapse the grid to one program (one core idle).
    if B == 1 and num_s == 1 and num_c == 1 and C * HW >= (1 << 18):
        if C % sublane == 0 and C >= 2 * sublane:
            TC = ((C // sublane + 1) // 2) * sublane          # ~half of C
        elif HW >= 256:
            THW = max(128, ((HW + 255) // 256) * 128)         # ~half of HW, 128-aligned
        num_s = pl.cdiv(HW, THW)
        num_c = pl.cdiv(C, TC)

    # Channel-tile axis innermost: the noise block index (b, 0, s) repeats there,
    # so the noise tile is DMAed once per (b, s) instead of once per grid step.
    grid = (B, num_s, num_c)

    out = pl.pallas_call(
        _noise_injection_kernel,
        out_shape=jax.ShapeDtypeStruct((B, C, HW), dtype),
        grid=grid,
        in_specs=[
            pl.BlockSpec(memory_space=pltpu.MemorySpace.SMEM),         # weight (f32)
            pl.BlockSpec((1, TC, THW), lambda b, s, c: (b, c, s)),     # image
            pl.BlockSpec((1, 1, THW), lambda b, s, c: (b, 0, s)),      # noise
        ],
        out_specs=pl.BlockSpec((1, TC, THW), lambda b, s, c: (b, c, s)),
        input_output_aliases=({1: 0} if donate_image else {}),
        compiler_params=pltpu.CompilerParams(
            # Every grid axis is independent elementwise work.
            dimension_semantics=("parallel", "parallel", "parallel"),
            vmem_limit_bytes=vmem_limit,
        ),
    )(weight, img2, noise2)

    return out.reshape(B, C, H, W)


if __name__ == "__main__":
    key = jax.random.PRNGKey(0)
    (k_img, k_noise, k_def, k_img2, k_noise2, k_img3, k_noise3) = jax.random.split(key, 7)

    # --- small test (module's toy shapes) -----------------------------------
    B, C, H, W = 2, 4, 16, 16
    image = jax.random.normal(k_img, (B, C, H, W), dtype=jnp.float32)
    noise = jax.random.normal(k_noise, (B, 1, H, W), dtype=jnp.float32)
    w0 = jnp.zeros((1,), dtype=jnp.float32)            # nn.Parameter(torch.zeros(1))
    w1 = jnp.array([0.37], dtype=jnp.float32)

    out0 = noise_injection(image, w0, noise)
    out1 = noise_injection(image, w1, noise)
    jax.block_until_ready(out0)
    jax.block_until_ready(out1)
    assert out0.shape == (B, C, H, W)
    assert bool(jnp.allclose(out0, image + w0[0] * noise, atol=1e-6))
    assert bool(jnp.allclose(out1, image + w1[0] * noise, atol=1e-6))

    # Default-noise path (noise drawn in the wrapper from an explicit key).
    outd = noise_injection(image, w1, None, key=k_def)
    jax.block_until_ready(outd)
    assert outd.shape == (B, C, H, W)
    assert bool(jnp.all(jnp.isfinite(outd)))

    # --- multi-tile grid: exercises the channel split that keeps both v7x TCs busy
    B2, C2, H2, W2 = 1, 128, 128, 128
    image2 = jax.random.normal(k_img2, (B2, C2, H2, W2), dtype=jnp.float32)
    noise2 = jax.random.normal(k_noise2, (B2, 1, H2, W2), dtype=jnp.float32)
    out2 = noise_injection(image2, w1, noise2)
    jax.block_until_ready(out2)
    assert bool(jnp.allclose(out2, image2 + w1[0] * noise2, atol=1e-6))

    # --- ragged spatial extent (HW not a multiple of 128) with a forced small
    # tile budget, so the masked (cdiv) last spatial block path is exercised.
    B3, C3, H3, W3 = 1, 8, 20, 20
    image3 = jax.random.normal(k_img3, (B3, C3, H3, W3), dtype=jnp.float32)
    noise3 = jax.random.normal(k_noise3, (B3, 1, H3, W3), dtype=jnp.float32)
    out3 = noise_injection(image3, w1, noise3, _tile_budget_bytes=8 * 1024)
    jax.block_until_ready(out3)
    assert bool(jnp.allclose(out3, image3 + w1[0] * noise3, atol=1e-6))

    print("KERNEL_OK")
</pallas_src>

<mosaic_0001>
module attributes {stable_mosaic.version = 11 : i64} {
  func.func @_noise_injection_kernel(%arg0: i32, %arg1: i32, %arg2: i32, %arg3: memref<1xf32, #tpu.memory_space<smem>>, %arg4: memref<1x4x256xf32, #tpu.memory_space<vmem>>, %arg5: memref<1x1x256xf32, #tpu.memory_space<vmem>>, %arg6: memref<1x4x256xf32, #tpu.memory_space<vmem>>) attributes {dimension_semantics = [#tpu.dimension_semantics<parallel>, #tpu.dimension_semantics<parallel>, #tpu.dimension_semantics<parallel>], iteration_bounds = array<i64: 2, 1, 1>, scalar_prefetch = 0 : i64, scratch_operands = 0 : i64, tpu.core_type = #tpu.core_type<tc>, window_params = [{transform_indices = @transform_0, window_bounds = array<i64: 1>}, {transform_indices = @transform_1, window_bounds = array<i64: 1, 4, 256>}, {transform_indices = @transform_2, window_bounds = array<i64: 1, 1, 256>}, {transform_indices = @transform_3, window_bounds = array<i64: 1, 4, 256>}]} {
    %c0 = arith.constant 0 : index
    %0 = memref.load %arg3[%c0] : memref<1xf32, #tpu.memory_space<smem>>
    %c0_0 = arith.constant 0 : index
    %c0_1 = arith.constant 0 : index
    %c0_2 = arith.constant 0 : index
    %1 = vector.load %arg5[%c0_0, %c0_1, %c0_2] : memref<1x1x256xf32, #tpu.memory_space<vmem>>, vector<1x1x256xf32>
    %2 = vector.broadcast %0 : f32 to vector<1x1x256xf32>
    %3 = arith.mulf %2, %1 : vector<1x1x256xf32>
    %c0_3 = arith.constant 0 : index
    %c0_4 = arith.constant 0 : index
    %c0_5 = arith.constant 0 : index
    %4 = vector.load %arg4[%c0_3, %c0_4, %c0_5] : memref<1x4x256xf32, #tpu.memory_space<vmem>>, vector<1x4x256xf32>
    %5 = vector.broadcast %3 : vector<1x1x256xf32> to vector<1x4x256xf32>
    %6 = arith.addf %4, %5 : vector<1x4x256xf32>
    %c0_6 = arith.constant 0 : index
    %c0_7 = arith.constant 0 : index
    %c0_8 = arith.constant 0 : index
    %7 = vector.load %arg6[%c0_6, %c0_7, %c0_8] : memref<1x4x256xf32, #tpu.memory_space<vmem>>, vector<1x4x256xf32>
    tpu.vector_store %arg6[%c0_6, %c0_7, %c0_8], %6 {strides = array<i32>} : memref<1x4x256xf32, #tpu.memory_space<vmem>>, vector<1x4x256xf32>,
    return
  }
  func.func @transform_0(%arg0: i32, %arg1: i32, %arg2: i32) -> i32 {
    %c0_i32 = arith.constant 0 : i32
    %c0_i32_0 = arith.constant 0 : i32
    return %c0_i32 : i32
  }
  func.func @transform_1(%arg0: i32, %arg1: i32, %arg2: i32) -> (i32, i32, i32) {
    %c0_i32 = arith.constant 0 : i32
    return %arg0, %arg2, %arg1 : i32, i32, i32
  }
  func.func @transform_2(%arg0: i32, %arg1: i32, %arg2: i32) -> (i32, i32, i32) {
    %c0_i32 = arith.constant 0 : i32
    %c0_i32_0 = arith.constant 0 : i32
    return %arg0, %c0_i32, %arg1 : i32, i32, i32
  }
  func.func @transform_3(%arg0: i32, %arg1: i32, %arg2: i32) -> (i32, i32, i32) {
    %c0_i32 = arith.constant 0 : i32
    return %arg0, %arg2, %arg1 : i32, i32, i32
  }
}

</mosaic_0001>

<bundles_post_ra>
// kernel: tpu_custom_call.1
= control target key start
LH: loop header
LB: loop body
LE: loop exit
PB: predicated region body
PF: predicated region fallthrough
CT: control target
= control target key end

     0   :  { %s896_s0 = inlined_call_operand.<no memory space> [shape: f32[1], index: 0, kind: input, shape index: {}]   ;;  %s897_s1 = inlined_call_operand.hbm [shape: f32[2,4,256], index: 1, kind: input, shape index: {}]   ;;  %s898_s2 = inlined_call_operand.hbm [shape: f32[2,1,256], index: 2, kind: input, shape index: {}]   ;;  %s899_s3 = inlined_call_operand.hbm [shape: f32[2,4,256], index: 3, kind: output, shape index: {}]  }
   0x1   :  { %8 = sst [smem:[#allocation2]] %s896_s0 }
   0x2   :  { %9 = vsyncpa [#allocation4], 0 }
   0x3   :  { %11 = vsyncpa [#allocation4 + $0x1], 0 }
   0x4   :  { %12 = vsyncpa [#allocation7], 0 }
   0x5   :  { %14 = vsyncpa [#allocation7 + $0x1], 0 }
   0x6   :  { %15 = vsyncpa [#allocation5], 0 }
   0x7   :  { %17 = vsyncpa [#allocation5 + $0x1], 0  ;;  %s681_s14 = smov 0   ;;  %s683_s15 = smov 0  }
   0x8   :  { %s685_s16 = smov 0   ;;  %s687_s17 = smov 0  }
   0x9   :  { %s689_s18 = smov 0   ;;  %s691_s19 = smov 0  }
   0xa LB: > { %s418_s0 = sadd.s32 4294967295, %s653_s19   ;;  %s419_s20 = sadd.s32 4294967294, %s653_s19   ;;  %s653_s19 = sphi %s691_s19, %s23_s19   ;;  %s649_s18 = sphi %s689_s18, %s919_s18   ;;  %s645_s17 = sphi %s687_s17, %s918_s17   ;;  %s641_s16 = sphi %s685_s16, %s917_s16   ;;  %s637_s15 = sphi %s683_s15, %s916_s15   ;;  %s633_s14 = sphi %s681_s14, %s915_s14  }
   0xb   : > { %s42_s21 = sadd.s32 1, %s649_s18  ;;  %s74_s22 = sadd.s32 1, %s641_s16 }
   0xc   : > { %p44_p0 = scmp.ge.s32.totalorder %s42_s21, 2  ;;  %p81_p1 = scmp.ne.s32.totalorder %s641_s16, %s637_s15 }
   0xd   : > { %p82_p2 = scmp.eq.s32.totalorder %s653_s19, 0  ;;  %p87_p3 = scmp.ne.s32.totalorder %s637_s15, %s633_s14 }
   0xe   : > { %s921_s21 = smov (%p44_p0, %s42_s21), 0  ;;  %p88_p5 = scmp.eq.s32.totalorder %s418_s0, 0 }
   0xf   : > { %p722_p4 = por %p82_p2, %p81_p1  ;;  %s67_s24 = ssub.s32 %s649_s18, %s921_s21 }
  0x10   : > { %p143_p6 = scmp.eq.s32.totalorder %s418_s0, 1  ;;  %p72_p7 = scmp.eq.s32.totalorder %s67_s24, 0 }
  0x11   : > { %p728_p8 = por %p88_p5, %p87_p3  ;;  %p149_p10 = scmp.eq.s32.totalorder %s419_s20, 1 }
  0x12   : > { %p732_p9 = por %p143_p6, %p81_p1  ;;  %p457_p13 = scmp.lt.s32.totalorder %s653_s19, 2 }
  0x13   : > { %s903_s25 = scalar_select %p728_p8, 1, 0 }
  0x14   : > { %s904_s26 = scalar_select %p732_p9, 1, 0 }
  0x15   : > { %s737_s27 = scalar_select %p72_p7, %s641_s16, %s74_s22  }
  0x16   : > { %p739_p11 = por %p149_p10, %p87_p3  ;;  %s746_s29 = sand.u32 1, %s641_s16  }
  0x17   : > { %s422_s30 = sshll.u32 %s746_s29, 3  ;;  %s437_s4 = sshll.u32 %s649_s18, 7 }
  0x18   : > { %s905_s28 = scalar_select %p739_p11, 1, 0 }
  0x19   : > { %s753_s7 = scalar_lea.hbm %s897_s1, %s437_s4  ;;  %s176_s8 = scalar_lea.vmem [#allocation3], %s422_s30 }
  0x1a   : > { %s188_s9 = sshll.u32 %s176_s8, 4  ;;  %p759_p0 = pnand %p457_p13, %p722_p4  ;;  %s755_s9 = int_to_ptr.vmem [resolvable:$true] %s188_s9 }
  0x1b   : > { %s173_s11 = scalar_lea.sflag [#allocation4], %s746_s29  ;;  %s507_s12 = scalar_lea.hbm %s753_s7, 128 }
  0x1c   : > { %p508_p3 = scmp.ne.s32.totalorder %s753_s7, %s507_s12  ;;  %p509_p5 = pneg %p759_p0 }
  0x1d   : > { %s512_s20 = scalar_lea.hbm %s897_s1, 256  ;;  %p513_p4 = scmp.lt.u32.totalorder %s753_s7, %s897_s1 }
  0x1e   : > { %p510_p6 = pnand %p509_p5, %p508_p3  ;;  %p514_p10 = scmp.lt.u32.totalorder %s512_s20, %s507_s12 }
  0x1f   : > { %p516_p12 = scmp.lt.u32.totalorder %s507_s12, %s753_s7 }
  0x20   : > { %p511_p7 = pneg %p510_p6  ;;  %p515_p13 = por %p514_p10, %p513_p4 }
  0x22   : > { %p517_p1 = por %p516_p12, %p515_p13 }
  0x24   : > { %p518_p2 = pnand %p517_p1, %p511_p7 }
  0x26   : > { %521 = shalt.err (!%p518_p2)
}
  0x27   : > { %s522_s24 = scalar_lea.vmem %s755_s9, 128  ;;  %s655_s30 = smov [#allocation3]  }
  0x28   : > { %p523_p3 = scmp.ne.s32.totalorder %s755_s9, %s522_s24  ;;  %s527_s4 = sshll.u32 %s655_s30, 4  ;;  %s528_s4 = int_to_ptr.vmem [resolvable:$false] %s527_s4 }
  0x29   : > { %s529_s5 = scalar_lea.vmem %s528_s4, 256  ;;  %p530_p9 = scmp.lt.s32.totalorder %s755_s9, %s528_s4 }
  0x2a   : > { %p525_p6 = pnand %p523_p3, %p509_p5  ;;  %p531_p4 = scmp.lt.s32.totalorder %s529_s5, %s522_s24 }
  0x2c   : > { %p526_p11 = pneg %p525_p6  ;;  %p532_p10 = por %p531_p4, %p530_p9 }
  0x2e   : > { %p533_p12 = pnand %p532_p10, %p526_p11 }
  0x30   : > { %536 = shalt.err (!%p533_p12)
}
  0x31   : > { %449 = dma.hbm_to_vmem [thread:$0]  (!%p759_p0), %s753_s7, 128, %s755_s9, %s173_s11  }
  0x32   : > { %p907_p1 = scmp.lt.s32.totalorder %s653_s19, 3  ;;  %p908_p2 = scmp.ge.s32.totalorder %s653_s19, 1 }
  0x33   : > { %s425_s8 = sshll.u32 %s746_s29, 1  ;;  %s438_s12 = sshll.u32 %s649_s18, 5 }
  0x34   : > { %p795_p7 = pnand %p908_p2, %p907_p1  ;;  %s804_s20 = scalar_lea.hbm %s898_s2, %s438_s12 }
  0x35   : > { %s199_s22 = scalar_lea.vmem [#allocation6], %s425_s8  ;;  %s196_s7 = scalar_lea.sflag [#allocation7], %s746_s29 }
  0x36   : > { %s909_s6 = scalar_select %p795_p7, 1, 0 }
  0x37   : > { %s209_s23 = sshll.u32 %s199_s22, 4  ;;  %s537_s9 = scalar_lea.hbm %s804_s20, 32  ;;  %s210_s23 = int_to_ptr.vmem [resolvable:$true] %s209_s23 }
  0x38   : > { %p538_p9 = scmp.ne.s32.totalorder %s804_s20, %s537_s9  ;;  %s542_s30 = scalar_lea.hbm %s898_s2, 64 }
  0x39   : > { %p543_p3 = scmp.lt.u32.totalorder %s804_s20, %s898_s2  ;;  %p544_p6 = scmp.lt.u32.totalorder %s542_s30, %s537_s9 }
  0x3a   : > { %p540_p11 = pnand %p538_p9, %p509_p5  ;;  %p546_p10 = scmp.lt.u32.totalorder %s537_s9, %s804_s20 }
  0x3b   : > { %p545_p4 = por %p544_p6, %p543_p3 }
  0x3c   : > { %p541_p13 = pneg %p540_p11 }
  0x3d   : > { %p547_p12 = por %p546_p10, %p545_p4 }
  0x3f   : > { %p548_p1 = pnand %p547_p12, %p541_p13 }
  0x41   : > { %551 = shalt.err (!%p548_p1)
}
  0x42   : > { %s552_s29 = scalar_lea.vmem %s210_s23, 32  ;;  %s656_s8 = smov [#allocation6]  }
  0x43   : > { %p553_p2 = scmp.ne.s32.totalorder %s210_s23, %s552_s29  ;;  %s557_s12 = sshll.u32 %s656_s8, 4  ;;  %s558_s12 = int_to_ptr.vmem [resolvable:$false] %s557_s12 }
  0x44   : > { %s559_s13 = scalar_lea.vmem %s558_s12, 64  ;;  %p560_p8 = scmp.lt.s32.totalorder %s210_s23, %s558_s12 }
  0x45   : > { %p555_p9 = pnand %p553_p2, %p509_p5  ;;  %p561_p7 = scmp.lt.s32.totalorder %s559_s13, %s552_s29 }
  0x47   : > { %p556_p11 = pneg %p555_p9  ;;  %p562_p3 = por %p561_p7, %p560_p8 }
  0x49   : > { %p563_p6 = pnand %p562_p3, %p556_p11 }
  0x4b   : > { %566 = shalt.err (!%p563_p6)
}
  0x4c   : > { %452 = dma.hbm_to_vmem [thread:$0]  (!%p759_p0), %s804_s20, 32, %s210_s23, %s196_s7  }
  0x4d   : > { %p910_p13 = scmp.ne.s32.totalorder %s909_s6, 0 }
  0x4e   : > { %s829_s0 = sand.u32 (!%p910_p13), 1, %s637_s15   ;;  %p911_p5 = scmp.ne.s32.totalorder (!%p910_p13), %s903_s25, 0 }
  0x4f   : > { %218 = sbr.rel (%p910_p13) target bundleno = 119 (0x77), region = 32  ;;  %s429_s22 = sshll.u32 (!%p910_p13), %s829_s0, 3 }
  0x50   : > { %s221_s9 = scalar_lea.sflag (!%p910_p13), [#allocation4], %s829_s0  ;;  %s224_s11 = scalar_lea.vmem (!%p910_p13), [#allocation3], %s429_s22 }
  0x56   : > { %620 = dma.done.wait (%p911_p5), %s221_s9, 128  }
  0x57   : > { %622 = vsyncadd (%p911_p5), %s221_s9, 4294967168  ;;  %s430_s10 = sshll.u32 %s829_s0, 1  ;;  %s230_s6 = scalar_lea.sflag [#allocation7], %s829_s0 }
  0x58   : > { %s233_s20 = scalar_lea.vmem [#allocation6], %s430_s10 }
  0x59   : > { %624 = dma.done.wait (%p911_p5), %s230_s6, 32  }
  0x5a   : > { %626 = vsyncadd (%p911_p5), %s230_s6, 4294967264  ;;  %v270_v0 = vlaneseq  ;;  %s264_s23 = sld [smem:[#allocation2]]  ;;  %v265_v4 = vld [vmem:[%s233_s20] sm:$0x3]  ;;  %v268_v9 = vld [vmem:[%s224_s11] sm:$0xff]  ;;  %s260_s7 = scalar_lea.vmem [#allocation8], %s429_s22 }
  0x5b   : > { %s301_s24 = sshll.u32 %s260_s7, 4  ;;  %s439_s30 = sshll.u32 %s645_s17, 7  ;;  %s844_s24 = int_to_ptr.vmem [resolvable:$true] %s301_s24 }
  0x5c   : > { %v271_v1 = vshrl.u32 %v270_v0, 7  ;;  %s849_s5 = scalar_lea.hbm %s899_s3, %s439_s30  ;;  %s283_s29 = scalar_lea.sflag [#allocation5], %s829_s0 }
  0x5d   : > { %s567_s8 = scalar_lea.vmem %s844_s24, 128  ;;  %p912_p0 = scmp.ne.s32.totalorder %s904_s26, 0 }
  0x5e   : > { %v272_v2 = vsub.s32 0, %v271_v1  ;;  %v276_v3 = vsub.s32 1, %v271_v1  ;;  %p568_p8 = scmp.ne.s32.totalorder %s844_s24, %s567_s8  ;;  %s657_s17 = smov [#allocation8]  }
  0x5f   : > { %s571_s12 = sshll.u32 %s657_s17, 4  ;;  %s572_s12 = int_to_ptr.vmem [resolvable:$false] %s571_s12 }
  0x60   : > { %v266_v5 = vstv %s264_s23  ;;  %p569_p7 = pnand %p568_p8, %p912_p0  ;;  %s573_s13 = scalar_lea.vmem %s572_s12, 256 }
  0x61   : > { %v267_v6 = vmul.f32 %v266_v5, %v265_v4  ;;  %p574_p10 = scmp.lt.s32.totalorder %s844_s24, %s572_s12  ;;  %p575_p12 = scmp.lt.s32.totalorder %s573_s13, %s567_s8 }
  0x62   : > { %p570_p4 = pneg %p569_p7 }
  0x63   : > { %v273_v7 = vrot.slane %v267_v6, %v272_v2  ;;  %v277_v8 = vrot.slane %v267_v6, %v276_v3  ;;  %p576_p1 = por %p575_p12, %p574_p10 }
  0x65   : > { %v278_v10 = vcombine.low %v273_v7, %v277_v8  ;;  %p577_p2 = pnand %p576_p1, %p570_p4 }
  0x67   : > { %v280_v11 = vadd.f32 %v278_v10, %v268_v9 }
  0x69   : > { %281 = vst [vmem:[%s260_s7] sm:$0xff] %v280_v11 }
  0x6a   : > { %580 = shalt.err (!%p577_p2)
}
  0x6b   : > { %s581_s0 = scalar_lea.hbm %s849_s5, 128  ;;  %s585_s11 = scalar_lea.hbm %s899_s3, 256 }
  0x6c   : > { %p582_p9 = scmp.ne.s32.totalorder %s849_s5, %s581_s0  ;;  %p586_p6 = scmp.lt.u32.totalorder %s849_s5, %s899_s3 }
  0x6d   : > { %p587_p13 = scmp.lt.u32.totalorder %s585_s11, %s581_s0  ;;  %p589_p8 = scmp.lt.u32.totalorder %s581_s0, %s849_s5 }
  0x6e   : > { %p583_p11 = pnand %p582_p9, %p912_p0 }
  0x6f   : > { %p588_p5 = por %p587_p13, %p586_p6 }
  0x70   : > { %p584_p3 = pneg %p583_p11 }
  0x71   : > { %p590_p7 = por %p589_p8, %p588_p5 }
  0x73   : > { %p591_p4 = pnand %p590_p7, %p584_p3 }
  0x75   : > { %594 = shalt.err (!%p591_p4)
}
  0x76   : > { %444 = dma.vmem_to_hbm [thread:$0]  (%p912_p0), %s844_s24, 128, %s849_s5, %s283_s29  }
  0x77 PF: > { %s313_s20 = sand.u32 1, %s633_s14   ;;  %p913_p10 = scmp.ne.s32.totalorder %s905_s28, 0 }
  0x78   : > { %p914_p12 = scmp.ge.s32.totalorder %s653_s19, 2  ;;  %s314_s23 = scalar_lea.sflag [#allocation5], %s313_s20 }
  0x7a   : > { %p454_p1 = pnand %p914_p12, %p913_p10 }
  0x7c   : > { %628 = dma.done.wait (!%p454_p1), %s314_s23, 128  }
  0x7d   : > { %630 = vsyncadd (!%p454_p1), %s314_s23, 4294967168  ;;  %s23_s19 = sadd.s32 1, %s653_s19   ;;  %s915_s14 = smov %s637_s15 }
  0x7e   : > { %p20_p2 = scmp.ge.s32.totalorder %s23_s19, 4   ;;  %s916_s15 = smov %s641_s16 }
  0x7f   : > { %s917_s16 = smov %s737_s27  ;;  %s918_s17 = smov %s649_s18 }
  0x80   : > { %s919_s18 = smov %s921_s21  ;;  %22 = sbr.rel (!%p20_p2) target bundleno = 10 (0xa), region = 90 }
  0x87   :  { %319 = vsyncpa [#allocation4], 1 }
  0x88   :  { %321 = vsyncpa [#allocation4 + $0x1], 1 }
  0x89   :  { %322 = vsyncpa [#allocation7], 1 }
  0x8a   :  { %324 = vsyncpa [#allocation7 + $0x1], 1 }
  0x8b   :  { %325 = vsyncpa [#allocation5], 1 }
  0x8c   :  { %327 = vsyncpa [#allocation5 + $0x1], 1 }

</bundles_post_ra>
